<compile_context>
chip_gen: v7x
topology: tpu7x:2x2x1
jax: 0.10.0
libtpu: 0.0.40
codegen_flags: <defaults>
</compile_context>

<pallas_src>
import functools

import jax
import jax.numpy as jnp
from jax import lax
from jax.experimental import pallas as pl
from jax.experimental.pallas import tpu as pltpu


def _actor_critic_kernel(act_dim, x_ref, w1_ref, b1_ref, wh_ref, bh_ref, out_ref):
    # shared trunk: Linear + Tanh (MXU matmul + VPU/EUP elementwise)
    h = jnp.tanh(
        jnp.dot(x_ref[...], w1_ref[...], preferred_element_type=jnp.float32)
        + b1_ref[...]
    )

    # fused heads: one (hidden, 128) matmul; lanes [0, act_dim) = pi logits,
    # lane act_dim = value, remaining lanes are zero padding.
    heads = (jnp.dot(h, wh_ref[...], preferred_element_type=jnp.float32)
             + bh_ref[...])

    lane = lax.broadcasted_iota(jnp.int32, heads.shape, 1)
    is_pi = lane < act_dim

    # masked softmax over the pi lanes only
    logits = jnp.where(is_pi, heads, jnp.full_like(heads, -1e30))
    m = jnp.max(logits, axis=-1, keepdims=True)
    e = jnp.where(is_pi, jnp.exp(logits - m), 0.0)
    s = jnp.sum(e, axis=-1, keepdims=True)
    inv = pl.reciprocal(s, approx=True)          # EUP slot, frees VALU bundles
    pi = e * inv                                 # zero on non-pi lanes already

    # pack value into lane act_dim of the same lane-dense output slab
    v_col = jnp.where(lane == act_dim, heads, 0.0)
    out_ref[...] = pi + v_col


def actor_critic_forward(x, w1, b1, wpi, bpi, wv, bv, *, tile_b=128):
    """x:(B,obs) w1:(obs,H) b1:(1,H) wpi:(H,A) bpi:(1,A) wv:(H,1) bv:(1,1)."""
    B, obs_dim = x.shape
    hidden = w1.shape[1]
    act_dim = wpi.shape[1]
    assert act_dim + 1 <= 128, "fused head assumes act_dim + 1 <= 128"

    # lane-pad the contraction (obs) dim and the fused head output dim
    obs_pad = max(128, pl.cdiv(obs_dim, 128) * 128)
    head_pad = 128

    x_p = jnp.pad(x.astype(jnp.float32), ((0, 0), (0, obs_pad - obs_dim)))
    w1_p = jnp.pad(w1.astype(jnp.float32), ((0, obs_pad - obs_dim), (0, 0)))

    # fuse policy and value heads: W_heads = [Wpi | Wv | 0], b_heads = [bpi | bv | 0]
    wh = jnp.zeros((hidden, head_pad), jnp.float32)
    wh = wh.at[:, :act_dim].set(wpi).at[:, act_dim:act_dim + 1].set(wv)
    bh = jnp.zeros((1, head_pad), jnp.float32)
    bh = bh.at[:, :act_dim].set(bpi.reshape(1, act_dim))
    bh = bh.at[:, act_dim].set(bv.reshape(()))

    # pad batch to a multiple of the batch tile
    b_pad = pl.cdiv(B, tile_b) * tile_b
    if b_pad != B:
        x_p = jnp.pad(x_p, ((0, b_pad - B), (0, 0)))

    kernel = functools.partial(_actor_critic_kernel, act_dim)

    out = pl.pallas_call(
        kernel,
        out_shape=jax.ShapeDtypeStruct((b_pad, head_pad), jnp.float32),
        grid_spec=pltpu.PrefetchScalarGridSpec(
            num_scalar_prefetch=0,
            grid=(b_pad // tile_b,),
            in_specs=[
                pl.BlockSpec((tile_b, obs_pad), lambda i: (i, 0)),   # x batch tile
                pl.BlockSpec((obs_pad, hidden), lambda i: (0, 0)),   # W1 (resident)
                pl.BlockSpec((1, hidden), lambda i: (0, 0)),         # b1 (resident)
                pl.BlockSpec((hidden, head_pad), lambda i: (0, 0)),  # fused W heads
                pl.BlockSpec((1, head_pad), lambda i: (0, 0)),       # fused b heads
            ],
            out_specs=pl.BlockSpec((tile_b, head_pad), lambda i: (i, 0)),
        ),
        compiler_params=pltpu.CompilerParams(
            dimension_semantics=("parallel",),
        ),
    )(x_p, w1_p, b1.astype(jnp.float32), wh, bh)

    pi = out[:B, :act_dim]
    v = out[:B, act_dim:act_dim + 1]
    return pi, v


def _init_linear(key, fan_in, fan_out):
    """PyTorch-style default init: U(-1/sqrt(fan_in), 1/sqrt(fan_in))."""
    kw, kb = jax.random.split(key)
    bound = 1.0 / jnp.sqrt(jnp.float32(fan_in))
    w = jax.random.uniform(kw, (fan_in, fan_out), jnp.float32, -bound, bound)
    b = jax.random.uniform(kb, (1, fan_out), jnp.float32, -bound, bound)
    return w, b


if __name__ == "__main__":
    # QWOP-like shapes: obs_dim=32, act_dim=8 discrete actions, hidden=256.
    # B=256 with TILE_B=128 exercises the batch-tiled "parallel" grid (2 steps).
    B, OBS_DIM, HIDDEN, ACT_DIM = 256, 32, 256, 8

    key = jax.random.PRNGKey(0)
    kx, k1, k2, k3 = jax.random.split(key, 4)

    x = jax.random.normal(kx, (B, OBS_DIM), jnp.float32)

    w1, b1 = _init_linear(k1, OBS_DIM, HIDDEN)      # shared Linear
    wpi, bpi = _init_linear(k2, HIDDEN, ACT_DIM)    # pi head Linear
    wv, bv = _init_linear(k3, HIDDEN, 1)            # v head Linear

    pi, v = actor_critic_forward(x, w1, b1, wpi, bpi, wv, bv, tile_b=128)
    jax.block_until_ready((pi, v))

    # Pure-JAX reference check.
    h_ref = jnp.tanh(x @ w1 + b1)
    pi_ref = jax.nn.softmax(h_ref @ wpi + bpi, axis=-1)
    v_ref = h_ref @ wv + bv

    assert pi.shape == (B, ACT_DIM) and v.shape == (B, 1)
    # pi uses the EUP approximate reciprocal -> allow a slightly looser tol.
    assert jnp.allclose(pi, pi_ref, atol=5e-3, rtol=5e-3)
    assert jnp.allclose(v, v_ref, atol=1e-4, rtol=1e-4)
    assert jnp.allclose(jnp.sum(pi, axis=-1), 1.0, atol=5e-3)

    print("KERNEL_OK")
</pallas_src>

<mosaic_0001>
module attributes {stable_mosaic.version = 11 : i64} {
  func.func @_actor_critic_kernel(%arg0: i32, %arg1: memref<128x128xf32, #tpu.memory_space<vmem>>, %arg2: memref<128x256xf32, #tpu.memory_space<vmem>>, %arg3: memref<1x256xf32, #tpu.memory_space<vmem>>, %arg4: memref<256x128xf32, #tpu.memory_space<vmem>>, %arg5: memref<1x128xf32, #tpu.memory_space<vmem>>, %arg6: memref<128x128xf32, #tpu.memory_space<vmem>>) attributes {dimension_semantics = [#tpu.dimension_semantics<parallel>], iteration_bounds = array<i64: 2>, scalar_prefetch = 0 : i64, scratch_operands = 0 : i64, tpu.core_type = #tpu.core_type<tc>, window_params = [{transform_indices = @transform_0, window_bounds = array<i64: 128, 128>}, {pipeline_mode = #tpu.pipeline_mode<synchronous>, transform_indices = @transform_1, window_bounds = array<i64: 128, 256>}, {pipeline_mode = #tpu.pipeline_mode<synchronous>, transform_indices = @transform_2, window_bounds = array<i64: 1, 256>}, {pipeline_mode = #tpu.pipeline_mode<synchronous>, transform_indices = @transform_3, window_bounds = array<i64: 256, 128>}, {pipeline_mode = #tpu.pipeline_mode<synchronous>, transform_indices = @transform_4, window_bounds = array<i64: 1, 128>}, {transform_indices = @transform_5, window_bounds = array<i64: 128, 128>}]} {
    %c0 = arith.constant 0 : index
    %c0_0 = arith.constant 0 : index
    %0 = vector.load %arg1[%c0, %c0_0] : memref<128x128xf32, #tpu.memory_space<vmem>>, vector<128x128xf32>
    %c0_1 = arith.constant 0 : index
    %c0_2 = arith.constant 0 : index
    %1 = vector.load %arg2[%c0_1, %c0_2] : memref<128x256xf32, #tpu.memory_space<vmem>>, vector<128x256xf32>
    %cst = arith.constant dense<0.000000e+00> : vector<128x256xf32>
    %2 = tpu.matmul %0, %1, %cst {dimension_numbers = #tpu.dot_dimension_numbers<[1], [0], [0], [1], [0, 0, 1, 1], [], []>} : vector<128x128xf32>, vector<128x256xf32>, vector<128x256xf32> -> vector<128x256xf32>
    %c0_3 = arith.constant 0 : index
    %c0_4 = arith.constant 0 : index
    %3 = vector.load %arg3[%c0_3, %c0_4] : memref<1x256xf32, #tpu.memory_space<vmem>>, vector<1x256xf32>
    %4 = vector.broadcast %3 : vector<1x256xf32> to vector<128x256xf32>
    %5 = arith.addf %2, %4 : vector<128x256xf32>
    %6 = math.tanh %5 : vector<128x256xf32>
    %c0_5 = arith.constant 0 : index
    %c0_6 = arith.constant 0 : index
    %7 = vector.load %arg4[%c0_5, %c0_6] : memref<256x128xf32, #tpu.memory_space<vmem>>, vector<256x128xf32>
    %cst_7 = arith.constant dense<0.000000e+00> : vector<128x128xf32>
    %8 = tpu.matmul %6, %7, %cst_7 {dimension_numbers = #tpu.dot_dimension_numbers<[1], [0], [0], [1], [0, 0, 1, 1], [], []>} : vector<128x256xf32>, vector<256x128xf32>, vector<128x128xf32> -> vector<128x128xf32>
    %c0_8 = arith.constant 0 : index
    %c0_9 = arith.constant 0 : index
    %9 = vector.load %arg5[%c0_8, %c0_9] : memref<1x128xf32, #tpu.memory_space<vmem>>, vector<1x128xf32>
    %10 = vector.broadcast %9 : vector<1x128xf32> to vector<128x128xf32>
    %11 = arith.addf %8, %10 : vector<128x128xf32>
    %12 = tpu.iota {dimensions = array<i32: 1>} : vector<128x128xi32>
    %c8_i32 = arith.constant 8 : i32
    %13 = vector.broadcast %c8_i32 : i32 to vector<128x128xi32>
    %14 = arith.cmpi slt, %12, %13 : vector<128x128xi32>
    %cst_10 = arith.constant -1.000000e+30 : f32
    %15 = vector.broadcast %cst_10 : f32 to vector<128x128xf32>
    %16 = arith.select %14, %11, %15 : vector<128x128xi1>, vector<128x128xf32>
    %cst_11 = arith.constant dense<0xFF800000> : vector<128xf32>
    %17 = vector.multi_reduction <maximumf>, %16, %cst_11 [1] : vector<128x128xf32> to vector<128xf32>
    %18 = vector.shape_cast %17 : vector<128xf32> to vector<128x1xf32>
    %19 = vector.broadcast %18 : vector<128x1xf32> to vector<128x128xf32>
    %20 = arith.subf %16, %19 : vector<128x128xf32>
    %21 = math.exp %20 : vector<128x128xf32>
    %cst_12 = arith.constant 0.000000e+00 : f32
    %22 = vector.broadcast %cst_12 : f32 to vector<128x128xf32>
    %23 = arith.select %14, %21, %22 : vector<128x128xi1>, vector<128x128xf32>
    %cst_13 = arith.constant dense<0.000000e+00> : vector<128xf32>
    %24 = vector.multi_reduction <add>, %23, %cst_13 [1] : vector<128x128xf32> to vector<128xf32>
    %25 = vector.shape_cast %24 : vector<128xf32> to vector<128x1xf32>
    %26 = tpu.reciprocal %25 {approx = true} : vector<128x1xf32> -> vector<128x1xf32>
    %27 = vector.broadcast %26 : vector<128x1xf32> to vector<128x128xf32>
    %28 = arith.mulf %23, %27 : vector<128x128xf32>
    %c8_i32_14 = arith.constant 8 : i32
    %29 = vector.broadcast %c8_i32_14 : i32 to vector<128x128xi32>
    %30 = arith.cmpi eq, %12, %29 : vector<128x128xi32>
    %cst_15 = arith.constant 0.000000e+00 : f32
    %31 = vector.broadcast %cst_15 : f32 to vector<128x128xf32>
    %32 = arith.select %30, %11, %31 : vector<128x128xi1>, vector<128x128xf32>
    %33 = arith.addf %28, %32 : vector<128x128xf32>
    %c0_16 = arith.constant 0 : index
    %c0_17 = arith.constant 0 : index
    %34 = vector.load %arg6[%c0_16, %c0_17] : memref<128x128xf32, #tpu.memory_space<vmem>>, vector<128x128xf32>
    tpu.vector_store %arg6[%c0_16, %c0_17], %33 {strides = array<i32>} : memref<128x128xf32, #tpu.memory_space<vmem>>, vector<128x128xf32>,
    return
  }
  func.func @transform_0(%arg0: i32) -> (i32, i32) {
    %c0_i32 = arith.constant 0 : i32
    %c0_i32_0 = arith.constant 0 : i32
    return %arg0, %c0_i32 : i32, i32
  }
  func.func @transform_1(%arg0: i32) -> (i32, i32) {
    %c0_i32 = arith.constant 0 : i32
    %c0_i32_0 = arith.constant 0 : i32
    %c0_i32_1 = arith.constant 0 : i32
    return %c0_i32, %c0_i32_0 : i32, i32
  }
  func.func @transform_2(%arg0: i32) -> (i32, i32) {
    %c0_i32 = arith.constant 0 : i32
    %c0_i32_0 = arith.constant 0 : i32
    %c0_i32_1 = arith.constant 0 : i32
    return %c0_i32, %c0_i32_0 : i32, i32
  }
  func.func @transform_3(%arg0: i32) -> (i32, i32) {
    %c0_i32 = arith.constant 0 : i32
    %c0_i32_0 = arith.constant 0 : i32
    %c0_i32_1 = arith.constant 0 : i32
    return %c0_i32, %c0_i32_0 : i32, i32
  }
  func.func @transform_4(%arg0: i32) -> (i32, i32) {
    %c0_i32 = arith.constant 0 : i32
    %c0_i32_0 = arith.constant 0 : i32
    %c0_i32_1 = arith.constant 0 : i32
    return %c0_i32, %c0_i32_0 : i32, i32
  }
  func.func @transform_5(%arg0: i32) -> (i32, i32) {
    %c0_i32 = arith.constant 0 : i32
    %c0_i32_0 = arith.constant 0 : i32
    return %arg0, %c0_i32 : i32, i32
  }
}

</mosaic_0001>

<bundles_post_ra>
// kernel: tpu_custom_call.1
= control target key start
LH: loop header
LB: loop body
LE: loop exit
PB: predicated region body
PF: predicated region fallthrough
CT: control target
= control target key end

     0   :  { %10 = vsyncpa [#allocation3], 0  ;;  %s2246_s0 = inlined_call_operand.hbm [shape: f32[256,128], index: 0, kind: input, shape index: {}]   ;;  %s2247_s1 = inlined_call_operand.hbm [shape: f32[128,256], index: 1, kind: input, shape index: {}]   ;;  %s2248_s2 = inlined_call_operand.vmem [shape: f32[1,256], index: 2, kind: input, shape index: {}]   ;;  %s2249_s3 = inlined_call_operand.hbm [shape: f32[256,128], index: 3, kind: input, shape index: {}]   ;;  %s2250_s4 = inlined_call_operand.vmem [shape: f32[1,128], index: 4, kind: input, shape index: {}]   ;;  %s2251_s5 = inlined_call_operand.hbm [shape: f32[256,128], index: 5, kind: output, shape index: {}]  }
   0x1   :  { %12 = vsyncpa [#allocation3 + $0x1], 0 }
   0x2   :  { %13 = vsyncpa [#allocation6], 0 }
   0x3   :  { %14 = vsyncpa [#allocation4], 0 }
   0x4   :  { %16 = vsyncpa [#allocation4 + $0x1], 0  ;;  %s1611_s18 = smov 0   ;;  %s1613_s19 = smov 0  }
   0x5   :  { %s1615_s20 = smov 0   ;;  %s1617_s21 = smov 0  }
   0x6 LB: > { %s1632_s22 = sadd.s32 4294967295, %s1568_s21   ;;  %s1045_s23 = sadd.s32 4294967294, %s1568_s21   ;;  %s1568_s21 = sphi %s1617_s21, %s2271_s21   ;;  %s1564_s20 = sphi %s1615_s20, %s2270_s20   ;;  %s1560_s19 = sphi %s1613_s19, %s2269_s19   ;;  %s1556_s18 = sphi %s1611_s18, %s2268_s18  }
   0x7   : > { %p42_p0 = scmp.ne.s32.totalorder %s1560_s19, %s1556_s18  ;;  %p2252_p1 = scmp.eq.s32.totalorder %s1632_s22, 0 }
   0x8   : > { %p156_p3 = scmp.eq.s32.totalorder %s1045_s23, 1  ;;  %p1046_p5 = scmp.ge.s32.totalorder %s1568_s21, 1 }
   0x9   : > { %p1641_p4 = por %p2252_p1, %p42_p0  ;;  %p163_p7 = scmp.lt.s32.totalorder %s1568_s21, 3 }
   0xa   : > { %p1646_p6 = por %p156_p3, %p42_p0  ;;  %s1570_s27 = smov [#allocation5]  }
   0xb   : > { %s2255_s24 = scalar_select %p1641_p4, 1, 0 }
   0xc   : > { %s2256_s25 = scalar_select %p1646_p6, 1, 0 }
   0xd   : > { %p1651_p8 = pnand %p1046_p5, %p163_p7  ;;  %s175_s28 = sshll.u32 %s1570_s27, 4  ;;  %s1655_s28 = int_to_ptr.vmem [resolvable:$true] %s175_s28 }
   0xe   : > { %s1571_s30 = smov [#allocation7]   ;;  %s1412_s9 = scalar_lea.hbm %s2247_s1, 4096 }
   0xf   : > { %p1222_p9 = pneg %p1651_p8  ;;  %s191_s6 = sshll.u32 %s1571_s30, 4  ;;  %s1666_s6 = int_to_ptr.vmem [resolvable:$true] %s191_s6 }
  0x10   : > { %p1413_p12 = scmp.ne.s32.totalorder %s2247_s1, %s1412_s9  ;;  %p1419_p5 = scmp.lt.u32.totalorder %s1412_s9, %s2247_s1 }
  0x11   : > { %p1662_p11 = pnand %p1222_p9, %p2252_p1 }
  0x13   : > { %p1414_p13 = pneg %p1662_p11 }
  0x15   : > { %p1415_p0 = pnand %p1414_p13, %p1413_p12 }
  0x17   : > { %p1416_p3 = pneg %p1415_p0 }
  0x19   : > { %p1421_p7 = pnand %p1419_p5, %p1416_p3 }
  0x1b   : > { %1424 = shalt.err (!%p1421_p7)
}
  0x1c   : > { %s1425_s14 = scalar_lea.vmem %s1655_s28, 4096  ;;  %p1433_p2 = scmp.lt.s32.totalorder %s1655_s28, %s1655_s28 }
  0x1d   : > { %p1426_p9 = scmp.ne.s32.totalorder %s1655_s28, %s1425_s14  ;;  %p1434_p12 = scmp.lt.s32.totalorder %s1425_s14, %s1425_s14 }
  0x1f   : > { %p1428_p10 = pnand %p1426_p9, %p1414_p13  ;;  %p1435_p0 = por %p1434_p12, %p1433_p2 }
  0x21   : > { %p1429_p1 = pneg %p1428_p10 }
  0x23   : > { %p1436_p6 = pnand %p1435_p0, %p1429_p1 }
  0x25   : > { %1439 = shalt.err (!%p1436_p6)
}
  0x26   : > { %s1572_s15 = smov 256   ;;  %s1573_s16 = smov 16  }
  0x27   : > { %1225 = dma.hbm_to_vmem [thread:$0]  (!%p1662_p11), %s2247_s1, 4096, %s1655_s28, [#allocation6], %s1572_s15, %s1572_s15, %s1573_s16  }
  0x28   : > { %s1440_s7 = scalar_lea.hbm %s2249_s3, 4096 }
  0x29   : > { %p1441_p2 = scmp.ne.s32.totalorder %s2249_s3, %s1440_s7  ;;  %p1447_p10 = scmp.lt.u32.totalorder %s1440_s7, %s2249_s3 }
  0x2b   : > { %p1443_p1 = pnand %p1441_p2, %p1414_p13 }
  0x2d   : > { %p1444_p6 = pneg %p1443_p1 }
  0x2f   : > { %p1449_p3 = pnand %p1447_p10, %p1444_p6 }
  0x31   : > { %1452 = shalt.err (!%p1449_p3)
}
  0x32   : > { %s1453_s28 = scalar_lea.vmem %s1666_s6, 4096  ;;  %p1461_p12 = scmp.lt.s32.totalorder %s1666_s6, %s1666_s6 }
  0x33   : > { %p1454_p5 = scmp.ne.s32.totalorder %s1666_s6, %s1453_s28  ;;  %p1462_p0 = scmp.lt.s32.totalorder %s1453_s28, %s1453_s28 }
  0x35   : > { %p1456_p7 = pnand %p1454_p5, %p1414_p13  ;;  %p1463_p2 = por %p1462_p0, %p1461_p12 }
  0x37   : > { %p1457_p9 = pneg %p1456_p7 }
  0x39   : > { %p1464_p1 = pnand %p1463_p2, %p1457_p9 }
  0x3b   : > { %1467 = shalt.err (!%p1464_p1)
}
  0x3c   : > { %s1574_s12 = smov 128   ;;  %s1575_s13 = smov 8  }
  0x3d   : > { %1228 = dma.hbm_to_vmem [thread:$0]  (!%p1662_p11), %s2249_s3, 4096, %s1666_s6, [#allocation6], %s1574_s12, %s1574_s12, %s1575_s13  }
  0x3e   : > { %s1724_s16 = sadd.s32 1, %s1568_s21   ;;  %s29_s23 = sadd.s32 1, %s1564_s20 }
  0x3f   : > { %s26_s17 = ssub.s32 %s1568_s21, %s1724_s16  ;;  %p36_p6 = scmp.ne.s32.totalorder %s1564_s20, %s1560_s19 }
  0x40   : > { %p27_p13 = scmp.eq.s32.totalorder %s26_s17, 0  ;;  %p37_p10 = scmp.eq.s32.totalorder %s1568_s21, 0 }
  0x41   : > { %p2259_p5 = scmp.eq.s32.totalorder %s1632_s22, 1  ;;  %p1239_p9 = scmp.lt.s32.totalorder %s1568_s21, 2 }
  0x42   : > { %s1733_s27 = scalar_select %p27_p13, %s1564_s20, %s29_s23  }
  0x43   : > { %p38_p3 = por %p37_p10, %p36_p6  ;;  %p1737_p7 = por %p2259_p5, %p36_p6 }
  0x44   : > { %s208_s30 = sand.u32 1, %s1564_s20   ;;  %s1064_s6 = sshll.u32 %s1568_s21, 11 }
  0x45   : > { %s2260_s29 = scalar_select %p1737_p7, 1, 0 }
  0x46   : > { %s1050_s7 = sshll.u32 %s208_s30, 7  ;;  %s1747_s10 = scalar_lea.hbm %s2246_s0, %s1064_s6 }
  0x47   : > { %s212_s11 = scalar_lea.vmem [#allocation2], %s1050_s7  ;;  %p1751_p11 = pnand %p1239_p9, %p38_p3 }
  0x48   : > { %s219_s28 = sshll.u32 %s212_s11, 4  ;;  %s1755_s15 = scalar_lea.sflag [#allocation3], %s208_s30  ;;  %s1749_s28 = int_to_ptr.vmem [resolvable:$true] %s219_s28 }
  0x49   : > { %s1468_s17 = scalar_lea.hbm %s1747_s10, 2048  ;;  %p1470_p0 = pneg %p1751_p11 }
  0x4a   : > { %p1469_p12 = scmp.ne.s32.totalorder %s1747_s10, %s1468_s17  ;;  %s1473_s6 = scalar_lea.hbm %s2246_s0, 4096 }
  0x4b   : > { %p1474_p13 = scmp.lt.u32.totalorder %s1747_s10, %s2246_s0  ;;  %p1475_p6 = scmp.lt.u32.totalorder %s1473_s6, %s1468_s17 }
  0x4c   : > { %p1471_p2 = pnand %p1470_p0, %p1469_p12  ;;  %p1477_p3 = scmp.lt.u32.totalorder %s1468_s17, %s1747_s10 }
  0x4d   : > { %p1476_p10 = por %p1475_p6, %p1474_p13 }
  0x4e   : > { %p1472_p1 = pneg %p1471_p2 }
  0x4f   : > { %p1478_p5 = por %p1477_p3, %p1476_p10 }
  0x51   : > { %p1479_p9 = pnand %p1478_p5, %p1472_p1 }
  0x53   : > { %1482 = shalt.err (!%p1479_p9)
}
  0x54   : > { %s1483_s30 = scalar_lea.vmem %s1749_s28, 2048  ;;  %s1576_s11 = smov [#allocation2]  }
  0x55   : > { %p1484_p12 = scmp.ne.s32.totalorder %s1749_s28, %s1483_s30  ;;  %s1488_s23 = sshll.u32 %s1576_s11, 4  ;;  %s1489_s23 = int_to_ptr.vmem [resolvable:$false] %s1488_s23 }
  0x56   : > { %s1490_s7 = scalar_lea.vmem %s1489_s23, 4096  ;;  %p1491_p4 = scmp.lt.s32.totalorder %s1749_s28, %s1489_s23 }
  0x57   : > { %p1486_p2 = pnand %p1484_p12, %p1470_p0  ;;  %p1492_p13 = scmp.lt.s32.totalorder %s1490_s7, %s1483_s30 }
  0x59   : > { %p1487_p7 = pneg %p1486_p2  ;;  %p1493_p6 = por %p1492_p13, %p1491_p4 }
  0x5b   : > { %p1494_p10 = pnand %p1493_p6, %p1487_p7 }
  0x5d   : > { %1497 = shalt.err (!%p1494_p10)
}
  0x5e   : > { %1232 = dma.hbm_to_vmem [thread:$0]  (!%p1751_p11), %s1747_s10, 2048, %s1749_s28, %s1755_s15, %s1574_s12, %s1574_s12, %s1575_s13  }
  0x5f   : > { %231 = sbr.rel (%p1651_p8) target bundleno = 976 (0x3d0), region = 40  ;;  %s1789_s17 = sand.u32 (!%p1651_p8), 1, %s1560_s19  }
  0x60   : > { %s1054_s6 = sshll.u32 (!%p1651_p8), %s1789_s17, 7  ;;  %s234_s8 = scalar_lea.sflag (!%p1651_p8), [#allocation3], %s1789_s17 }
  0x61   : > { %s1795_s14 = scalar_lea.vmem (!%p1651_p8), [#allocation2], %s1054_s6  ;;  %p2262_p4 = scmp.ne.s32.totalorder (!%p1651_p8), %s2255_s24, 0 }
  0x66   : > { %1543 = dma.done.wait (%p2262_p4), %s234_s8, 2048  }
  0x67   : > { %1545 = vsyncadd (%p2262_p4), %s234_s8, 4294965248  ;;  %p2263_p7 = scmp.eq.s32.totalorder %s1632_s22, 0 }
  0x69   : > { %1547 = dma.done.wait (%p2263_p7), [#allocation6], 8192   ;;  %p2264_p8 = pmov %p2263_p7 }
  0x6a   : > { %v1577_v0 = vmov 0.0   ;;  %v291_v1 = vld [vmem:[#allocation5 + $0x8] sm:$0xff]  ;;  %v293_v2 = vld [vmem:[#allocation5 + $0x18] sm:$0xff]  ;;  %v290_v3 = vld [vmem:[#allocation5] sm:$0xff]  ;;  %s2147_s10 = scalar_lea.vmem [#allocation8], %s1054_s6  ;;  %s1065_s28 = sshll.u32 %s1632_s22, 11 }
  0x6b   : > { %1549 = vsyncadd (%p2264_p8), [#allocation6], 4294959104  ;;  %398 = vmatprep.mubr.f32.mxu0 %v1577_v0  ;;  %v1146_v4 = vpack.c.bf16 %v293_v2, %v291_v1  ;;  %v292_v5 = vld [vmem:[#allocation5 + $0x10] sm:$0xff]  ;;  %v295_v6 = vld [vmem:[#allocation5 + $0x28] sm:$0xff]  ;;  %s953_s15 = sshll.u32 %s2147_s10, 4  ;;  %s2198_s11 = scalar_lea.hbm %s2251_s5, %s1065_s28  ;;  %s2200_s15 = int_to_ptr.vmem [resolvable:$true] %s953_s15 }
  0x6c   : > { %v297_v7 = vld [vmem:[#allocation5 + $0x38] sm:$0xff]  ;;  %v1148_v8 = vpack.c.bf16 %v292_v5, %v290_v3  ;;  %v294_v10 = vld [vmem:[#allocation5 + $0x20] sm:$0xff]  ;;  %v296_v11 = vld [vmem:[#allocation5 + $0x30] sm:$0xff]  ;;  %s940_s23 = scalar_lea.sflag [#allocation4], %s1789_s17  ;;  %s1498_s22 = scalar_lea.vmem %s2200_s15, 2048 }
  0x6d   : > { %v1150_v9 = vpack.c.bf16 %v297_v7, %v295_v6  ;;  %v299_v12 = vld [vmem:[#allocation5 + $0x48] sm:$0xff]  ;;  %1147 = vmatprep.subr.bf16.mxu0 %v1146_v4  ;;  %v301_v13 = vld [vmem:[#allocation5 + $0x58] sm:$0xff]  ;;  %v1152_v14 = vpack.c.bf16 %v296_v11, %v294_v10  ;;  %v298_v16 = vld [vmem:[#allocation5 + $0x40] sm:$0xff]  ;;  %p1499_p11 = scmp.ne.s32.totalorder %s2200_s15, %s1498_s22  ;;  %p2265_p0 = scmp.ne.s32.totalorder %s2260_s29, 0 }
  0x6e   : > { %1149 = vmatpush1.bf16.msra.mxu0 %v1148_v8  ;;  %v1154_v15 = vpack.c.bf16 %v301_v13, %v299_v12  ;;  %v300_v17 = vld [vmem:[#allocation5 + $0x50] sm:$0xff]  ;;  %v303_v18 = vld [vmem:[#allocation5 + $0x68] sm:$0xff]  ;;  %v305_v19 = vld [vmem:[#allocation5 + $0x78] sm:$0xff]  ;;  %s1578_s7 = smov [#allocation8]  }
  0x6f   : > { %1151 = vmatprep.subr.bf16.mxu0 %v1150_v9  ;;  %v1156_v20 = vpack.c.bf16 %v300_v17, %v298_v16  ;;  %v1158_v21 = vpack.c.bf16 %v305_v19, %v303_v18  ;;  %v302_v22 = vld [vmem:[#allocation5 + $0x60] sm:$0xff]  ;;  %v304_v23 = vld [vmem:[#allocation5 + $0x70] sm:$0xff]  ;;  %v307_v24 = vld [vmem:[#allocation5 + $0x88] sm:$0xff]  ;;  %p1500_p1 = pnand %p1499_p11, %p2265_p0  ;;  %s1502_s6 = sshll.u32 %s1578_s7, 4  ;;  %s1503_s6 = int_to_ptr.vmem [resolvable:$false] %s1502_s6 }
  0x70   : > { %v309_v25 = vld [vmem:[#allocation5 + $0x98] sm:$0xff]  ;;  %v1160_v26 = vpack.c.bf16 %v304_v23, %v302_v22  ;;  %v306_v28 = vld [vmem:[#allocation5 + $0x80] sm:$0xff]  ;;  %v308_v29 = vld [vmem:[#allocation5 + $0x90] sm:$0xff]  ;;  %s1504_s8 = scalar_lea.vmem %s1503_s6, 4096  ;;  %p1505_p5 = scmp.lt.s32.totalorder %s2200_s15, %s1503_s6 }
  0x71   : > { %v1162_v27 = vpack.c.bf16 %v309_v25, %v307_v24  ;;  %v311_v30 = vld [vmem:[#allocation5 + $0xa8] sm:$0xff]  ;;  %v313_v31 = vld [vmem:[#allocation5 + $0xb8] sm:$0xff]  ;;  %v310_v32 = vld [vmem:[#allocation5 + $0xa0] sm:$0xff]  ;;  %v1164_v34 = vpack.c.bf16 %v308_v29, %v306_v28  ;;  %p1501_p3 = pneg %p1500_p1  ;;  %p1506_p9 = scmp.lt.s32.totalorder %s1504_s8, %s1498_s22 }
  0x72   : > { %1153 = vmatpush1.bf16.msra.mxu0 %v1152_v14  ;;  %v312_v33 = vld [vmem:[#allocation5 + $0xb0] sm:$0xff]  ;;  %v315_v35 = vld [vmem:[#allocation5 + $0xc8] sm:$0xff]  ;;  %v317_v36 = vld [vmem:[#allocation5 + $0xd8] sm:$0xff]  ;;  %v1166_v40 = vpack.c.bf16 %v313_v31, %v311_v30 }
  0x73   : > { %1155 = vmatprep.subr.bf16.mxu0 %v1154_v15  ;;  %v543_v37 = vld [vmem:[#allocation7 + $0x80] sm:$0xff]  ;;  %v544_v38 = vld [vmem:[#allocation7 + $0x88] sm:$0xff]  ;;  %v545_v43 = vld [vmem:[#allocation7 + $0x90] sm:$0xff]  ;;  %v1168_v51 = vpack.c.bf16 %v312_v33, %v310_v32  ;;  %v1170_v55 = vpack.c.bf16 %v317_v36, %v315_v35  ;;  %p1507_p12 = por %p1506_p9, %p1505_p5 }
  0x74   : > { %v527_v39 = vld [vmem:[#allocation7] sm:$0xff]  ;;  %v1178_v41 = vpack.c.bf16 %v544_v38, %v543_v37  ;;  %v528_v42 = vld [vmem:[#allocation7 + $0x8] sm:$0xff]  ;;  %v546_v44 = vld [vmem:[#allocation7 + $0x98] sm:$0xff] }
  0x75   : > { %v1180_v45 = vpack.c.bf16 %v528_v42, %v527_v39  ;;  %v1182_v46 = vpack.c.bf16 %v546_v44, %v545_v43  ;;  %v529_v47 = vld [vmem:[#allocation7 + $0x10] sm:$0xff]  ;;  %v530_v48 = vld [vmem:[#allocation7 + $0x18] sm:$0xff]  ;;  %v547_v49 = vld [vmem:[#allocation7 + $0xa0] sm:$0xff]  ;;  %p1508_p2 = pnand %p1507_p12, %p1501_p3 }
  0x76   : > { %1157 = vmatpush1.bf16.msra.mxu0 %v1156_v20  ;;  %1179 = vmatprep.subr.bf16.mxu1 %v1178_v41  ;;  %v548_v50 = vld [vmem:[#allocation7 + $0xa8] sm:$0xff]  ;;  %v314_v52 = vld [vmem:[#allocation5 + $0xc0] sm:$0xff]  ;;  %v316_v53 = vld [vmem:[#allocation5 + $0xd0] sm:$0xff]  ;;  %v1184_v54 = vpack.c.bf16 %v530_v48, %v529_v47 }
  0x77   : > { %1159 = vmatprep.subr.bf16.mxu0 %v1158_v21  ;;  %1181 = vmatpush3.bf16.msra.mxu1 %v1180_v45  ;;  %v319_v56 = vld [vmem:[#allocation5 + $0xe8] sm:$0xff]  ;;  %v1186_v57 = vpack.c.bf16 %v548_v50, %v547_v49  ;;  %v531_v58 = vld [vmem:[#allocation7 + $0x20] sm:$0xff]  ;;  %v321_v60 = vld [vmem:[#allocation5 + $0xf8] sm:$0xff]  ;;  %v1172_v63 = vpack.c.bf16 %v316_v53, %v314_v52  ;;  %v324_v49 = vlaneseq }
  0x78   : > { %1183 = vmatprep.subr.bf16.mxu1 %v1182_v46  ;;  %v532_v59 = vld [vmem:[#allocation7 + $0x28] sm:$0xff]  ;;  %v549_v61 = vld [vmem:[#allocation7 + $0xb0] sm:$0xff]  ;;  %v550_v62 = vld [vmem:[#allocation7 + $0xb8] sm:$0xff]  ;;  %v1174_v3 = vpack.c.bf16 %v321_v60, %v319_v56 }
  0x79   : > { %v318_v1 = vld [vmem:[#allocation5 + $0xe0] sm:$0xff]  ;;  %v1188_v2 = vpack.c.bf16 %v532_v59, %v531_v58  ;;  %v320_v4 = vld [vmem:[#allocation5 + $0xf0] sm:$0xff]  ;;  %v1190_v5 = vpack.c.bf16 %v550_v62, %v549_v61  ;;  %v534_v7 = vld [vmem:[#allocation7 + $0x38] sm:$0xff]  ;;  %v325_v50 = vshrl.u32 %v324_v49, 7 }
  0x7a   : > { %1161 = vmatpush1.bf16.msra.mxu0 %v1160_v26  ;;  %v533_v6 = vld [vmem:[#allocation7 + $0x30] sm:$0xff]  ;;  %v1176_v8 = vpack.c.bf16 %v320_v4, %v318_v1  ;;  %v274_v10 = vld [vmem:[%s1795_s14] sm:$0xff]  ;;  %v275_v11 = vld [vmem:[%s1795_s14 + $0x8] sm:$0xff] }
  0x7b   : > { %1163 = vmatprep.subr.bf16.mxu0 %v1162_v27  ;;  %1185 = vmatpush3.bf16.msra.mxu1 %v1184_v54  ;;  %v1192_v9 = vpack.c.bf16 %v534_v7, %v533_v6  ;;  %v276_v12 = vld [vmem:[%s1795_s14 + $0x10] sm:$0xff]  ;;  %v277_v13 = vld [vmem:[%s1795_s14 + $0x18] sm:$0xff]  ;;  %v278_v14 = vld [vmem:[%s1795_s14 + $0x20] sm:$0xff]  ;;  %v330_v53 = vsub.s32 1, %v325_v50 }
  0x7c   : > { %1187 = vmatprep.subr.bf16.mxu1 %v1186_v57  ;;  %v279_v15 = vld [vmem:[%s1795_s14 + $0x28] sm:$0xff]  ;;  %v280_v16 = vld [vmem:[%s1795_s14 + $0x30] sm:$0xff]  ;;  %v281_v17 = vld [vmem:[%s1795_s14 + $0x38] sm:$0xff] }
  0x7d   : > { %v282_v18 = vld [vmem:[%s1795_s14 + $0x40] sm:$0xff]  ;;  %v283_v19 = vld [vmem:[%s1795_s14 + $0x48] sm:$0xff]  ;;  %v284_v20 = vld [vmem:[%s1795_s14 + $0x50] sm:$0xff] }
  0x7e   : > { %1165 = vmatpush1.bf16.msra.mxu0 %v1164_v34  ;;  %v285_v21 = vld [vmem:[%s1795_s14 + $0x58] sm:$0xff]  ;;  %v286_v22 = vld [vmem:[%s1795_s14 + $0x60] sm:$0xff]  ;;  %v287_v23 = vld [vmem:[%s1795_s14 + $0x68] sm:$0xff] }
  0x7f   : > { %1167 = vmatprep.subr.bf16.mxu0 %v1166_v40  ;;  %1189 = vmatpush3.bf16.msra.mxu1 %v1188_v2  ;;  %v288_v24 = vld [vmem:[%s1795_s14 + $0x70] sm:$0xff]  ;;  %v289_v25 = vld [vmem:[%s1795_s14 + $0x78] sm:$0xff]  ;;  %v551_v26 = vld [vmem:[#allocation7 + $0xc0] sm:$0xff] }
  0x80   : > { %1191 = vmatprep.subr.bf16.mxu1 %v1190_v5  ;;  %v552_v27 = vld [vmem:[#allocation7 + $0xc8] sm:$0xff]  ;;  %v535_v29 = vld [vmem:[#allocation7 + $0x40] sm:$0xff]  ;;  %v553_v32 = vld [vmem:[#allocation7 + $0xd0] sm:$0xff] }
  0x81   : > { %v1194_v28 = vpack.c.bf16 %v552_v27, %v551_v26  ;;  %v536_v30 = vld [vmem:[#allocation7 + $0x48] sm:$0xff]  ;;  %v554_v33 = vld [vmem:[#allocation7 + $0xd8] sm:$0xff]  ;;  %v537_v35 = vld [vmem:[#allocation7 + $0x50] sm:$0xff] }
  0x82   : > { %1169 = vmatpush1.bf16.msra.mxu0 %v1168_v51  ;;  %v1196_v31 = vpack.c.bf16 %v536_v30, %v535_v29  ;;  %v1198_v34 = vpack.c.bf16 %v554_v33, %v553_v32  ;;  %v538_v36 = vld [vmem:[#allocation7 + $0x58] sm:$0xff]  ;;  %v555_v38 = vld [vmem:[#allocation7 + $0xe0] sm:$0xff]  ;;  %v540_v41 = vld [vmem:[#allocation7 + $0x68] sm:$0xff]  ;;  %v326_v51 = vsub.s32 0, %v325_v50 }
  0x83   : > { %1171 = vmatprep.subr.bf16.mxu0 %v1170_v55  ;;  %1193 = vmatpush3.bf16.msra.mxu1 %v1192_v9  ;;  %v1200_v37 = vpack.c.bf16 %v538_v36, %v537_v35  ;;  %v539_v40 = vld [vmem:[#allocation7 + $0x60] sm:$0xff]  ;;  %v557_v43 = vld [vmem:[#allocation7 + $0xf0] sm:$0xff]  ;;  %v558_v44 = vld [vmem:[#allocation7 + $0xf8] sm:$0xff] }
  0x84   : > { %1195 = vmatprep.subr.bf16.mxu1 %v1194_v28  ;;  %v1204_v42 = vpack.c.bf16 %v540_v41, %v539_v40  ;;  %v1206_v45 = vpack.c.bf16 %v558_v44, %v557_v43  ;;  %v541_v46 = vld [vmem:[#allocation7 + $0x70] sm:$0xff]  ;;  %v542_v47 = vld [vmem:[#allocation7 + $0x78] sm:$0xff]  ;;  %v322_v52 = vld [vmem:[%s2248_s2] sm:$0x3] }
  0x85   : > { %v1208_v48 = vpack.c.bf16 %v542_v47, %v541_v46  ;;  %v1841_v54 = vrot.slane %v322_v52, %v326_v51  ;;  %v1843_v55 = vrot.slane %v322_v52, %v330_v53 }
  0x86   : > { %1173 = vmatpush1.bf16.msra.mxu0 %v1172_v63 }
  0x87   : > { %1175 = vmatprep.subr.bf16.mxu0 %v1174_v3  ;;  %1197 = vmatpush3.bf16.msra.mxu1 %v1196_v31 }
  0x88   : > { %1199 = vmatprep.subr.bf16.mxu1 %v1198_v34 }
  0x8a   : > { %1177 = vmatpush1.bf16.msra.mxu0 %v1176_v8 }
  0x8b   : > { %1201 = vmatpush3.bf16.msra.mxu1 %v1200_v37 }
  0x8d   : > { %399 = vmatmul.mubr.f32.vlgmr.msra.gmra.mrb[0].mxu0 %v274_v10 }
  0x8e   : > { %404 = vmatprep.mubr.f32.mxu0 %v1577_v0 }
  0x91   : > { %405 = vmatmul.mubr.f32.gmra.mrb[2].mxu0 %v275_v11 }
  0x92   : > { %410 = vmatprep.mubr.f32.mxu0 %v1577_v0 }
  0x95   : > { %411 = vmatmul.mubr.f32.gmra.mrb[4].mxu0 %v276_v12 }
  0x96   : > { %416 = vmatprep.mubr.f32.mxu0 %v1577_v0 }
  0x99   : > { %417 = vmatmul.mubr.f32.gmra.mrb[6].mxu0 %v277_v13 }
  0x9a   : > { %422 = vmatprep.mubr.f32.mxu0 %v1577_v0 }
  0x9d   : > { %423 = vmatmul.mubr.f32.gmra.mrb[8].mxu0 %v278_v14 }
  0x9e   : > { %428 = vmatprep.mubr.f32.mxu0 %v1577_v0 }
  0xa1   : > { %429 = vmatmul.mubr.f32.gmra.mrb[10].mxu0 %v279_v15 }
  0xa2   : > { %434 = vmatprep.mubr.f32.mxu0 %v1577_v0 }
  0xa5   : > { %435 = vmatmul.mubr.f32.gmra.mrb[12].mxu0 %v280_v16 }
  0xa6   : > { %440 = vmatprep.mubr.f32.mxu0 %v1577_v0 }
  0xa9   : > { %441 = vmatmul.mubr.f32.gmra.mrb[14].mxu0 %v281_v17 }
  0xaa   : > { %446 = vmatprep.mubr.f32.mxu0 %v1577_v0 }
  0xad   : > { %447 = vmatmul.mubr.f32.gmra.mrb[16].mxu0 %v282_v18 }
  0xae   : > { %452 = vmatprep.mubr.f32.mxu0 %v1577_v0 }
  0xb1   : > { %453 = vmatmul.mubr.f32.gmra.mrb[18].mxu0 %v283_v19 }
  0xb2   : > { %458 = vmatprep.mubr.f32.mxu0 %v1577_v0 }
  0xb5   : > { %459 = vmatmul.mubr.f32.gmra.mrb[20].mxu0 %v284_v20 }
  0xb6   : > { %464 = vmatprep.mubr.f32.mxu0 %v1577_v0 }
  0xb9   : > { %465 = vmatmul.mubr.f32.gmra.mrb[22].mxu0 %v285_v21 }
  0xba   : > { %470 = vmatprep.mubr.f32.mxu0 %v1577_v0 }
  0xbd   : > { %471 = vmatmul.mubr.f32.gmra.mrb[24].mxu0 %v286_v22 }
  0xbe   : > { %476 = vmatprep.mubr.f32.mxu0 %v1577_v0 }
  0xc1   : > { %477 = vmatmul.mubr.f32.gmra.mrb[26].mxu0 %v287_v23 }
  0xc2   : > { %482 = vmatprep.mubr.f32.mxu0 %v1577_v0 }
  0xc5   : > { %483 = vmatmul.mubr.f32.gmra.mrb[28].mxu0 %v288_v24 }
  0xc6   : > { %488 = vmatprep.mubr.f32.mxu0 %v1577_v0  ;;  %v556_v0 = vld [vmem:[#allocation7 + $0xe8] sm:$0xff] }
  0xc7   : > { %v1202_v39 = vpack.c.bf16 %v556_v0, %v555_v38 }
  0xc9   : > { %489 = vmatmul.mubr.f32.gmra.mrb[30].mxu0 %v289_v25  ;;  %1203 = vmatprep.subr.bf16.mxu1 %v1202_v39 }
  0xca   : > { %1205 = vmatpush3.bf16.msra.mxu1 %v1204_v42 }
  0xcb   : > { %1207 = vmatprep.subr.bf16.mxu1 %v1206_v45 }
  0xce   : > { %1209 = vmatpush3.bf16.msra.mxu1 %v1208_v48 }
 0x160   : > { %v400_v56 = vpop.f32.mrb[0].mxu0 }
 0x161   : > { %v401_v57 = vadd.f32 %v400_v56, %v1841_v54  ;;  %v402_v58 = vpop.f32.mrb[1].mxu0 }
 0x162   : > { %v403_v59 = vadd.f32 %v402_v58, %v1843_v55 }
 0x164   : > { %1284 = vtanh.f32 %v403_v59  ;;  %v406_v60 = vpop.f32.mrb[2].mxu0 }
 0x165   : > { %1286 = vtanh.f32 %v401_v57  ;;  %v407_v61 = vadd.f32 %v406_v60, %v1841_v54  ;;  %v408_v62 = vpop.f32.mrb[3].mxu0 }
 0x166   : > { %v409_v63 = vadd.f32 %v408_v62, %v1843_v55 }
 0x168   : > { %1288 = vtanh.f32 %v409_v63  ;;  %v412_v1 = vpop.f32.mrb[4].mxu0 }
 0x169   : > { %1290 = vtanh.f32 %v407_v61  ;;  %v413_v2 = vadd.f32 %v412_v1, %v1841_v54  ;;  %v414_v3 = vpop.f32.mrb[5].mxu0 }
 0x16a   : > { %v415_v4 = vadd.f32 %v414_v3, %v1843_v55 }
 0x16c   : > { %1292 = vtanh.f32 %v415_v4  ;;  %v418_v5 = vpop.f32.mrb[6].mxu0 }
 0x16d   : > { %1294 = vtanh.f32 %v413_v2  ;;  %v419_v6 = vadd.f32 %v418_v5, %v1841_v54  ;;  %v420_v7 = vpop.f32.mrb[7].mxu0 }
 0x16e   : > { %v1285_v8 = vpop.eup %1284  ;;  %v421_v9 = vadd.f32 %v420_v7, %v1843_v55 }
 0x16f   : > { %v1287_v10 = vpop.eup %1286  ;;  %630 = vmatprep.mubr.f32.mxu1 %v1285_v8 }
 0x170   : > { %1296 = vtanh.f32 %v421_v9  ;;  %v424_v11 = vpop.f32.mrb[8].mxu0  ;;  %631 = vmatmul.mubr.f32.vlgmr.msra.gmra.mrb[0].mxu1 %v1287_v10 }
 0x171   : > { %1298 = vtanh.f32 %v419_v6  ;;  %v425_v12 = vadd.f32 %v424_v11, %v1841_v54  ;;  %v426_v13 = vpop.f32.mrb[9].mxu0 }
 0x172   : > { %v1289_v14 = vpop.eup %1288  ;;  %v427_v15 = vadd.f32 %v426_v13, %v1843_v55 }
 0x173   : > { %v1291_v16 = vpop.eup %1290  ;;  %635 = vmatprep.mubr.f32.mxu1 %v1289_v14 }
 0x174   : > { %1300 = vtanh.f32 %v427_v15  ;;  %v430_v17 = vpop.f32.mrb[10].mxu0  ;;  %636 = vmatmul.mubr.f32.gmra.mrb[2].mxu1 %v1291_v16 }
 0x175   : > { %1302 = vtanh.f32 %v425_v12  ;;  %v431_v18 = vadd.f32 %v430_v17, %v1841_v54  ;;  %v432_v19 = vpop.f32.mrb[11].mxu0 }
 0x176   : > { %v1293_v20 = vpop.eup %1292  ;;  %v433_v21 = vadd.f32 %v432_v19, %v1843_v55 }
 0x177   : > { %v1295_v22 = vpop.eup %1294  ;;  %640 = vmatprep.mubr.f32.mxu1 %v1293_v20 }
 0x178   : > { %1304 = vtanh.f32 %v433_v21  ;;  %v436_v23 = vpop.f32.mrb[12].mxu0  ;;  %641 = vmatmul.mubr.f32.gmra.mrb[4].mxu1 %v1295_v22 }
 0x179   : > { %1306 = vtanh.f32 %v431_v18  ;;  %v437_v24 = vadd.f32 %v436_v23, %v1841_v54  ;;  %v438_v25 = vpop.f32.mrb[13].mxu0 }
 0x17a   : > { %v1297_v26 = vpop.eup %1296  ;;  %v439_v27 = vadd.f32 %v438_v25, %v1843_v55 }
 0x17b   : > { %v1299_v28 = vpop.eup %1298  ;;  %645 = vmatprep.mubr.f32.mxu1 %v1297_v26 }
 0x17c   : > { %1308 = vtanh.f32 %v439_v27  ;;  %v442_v29 = vpop.f32.mrb[14].mxu0  ;;  %646 = vmatmul.mubr.f32.gmra.mrb[6].mxu1 %v1299_v28 }
 0x17d   : > { %1310 = vtanh.f32 %v437_v24  ;;  %v443_v30 = vadd.f32 %v442_v29, %v1841_v54  ;;  %v444_v31 = vpop.f32.mrb[15].mxu0  ;;  %v1883_v29 = vld [vmem:[%s2250_s4] ss:$0 sm:$0xff] }
 0x17e   : > { %v1301_v32 = vpop.eup %1300  ;;  %v445_v33 = vadd.f32 %v444_v31, %v1843_v55 }
 0x17f   : > { %v1303_v34 = vpop.eup %1302  ;;  %650 = vmatprep.mubr.f32.mxu1 %v1301_v32 }
 0x180   : > { %1312 = vtanh.f32 %v445_v33  ;;  %v448_v35 = vpop.f32.mrb[16].mxu0  ;;  %651 = vmatmul.mubr.f32.gmra.mrb[8].mxu1 %v1303_v34 }
 0x181   : > { %1314 = vtanh.f32 %v443_v30  ;;  %v449_v36 = vadd.f32 %v448_v35, %v1841_v54  ;;  %v450_v37 = vpop.f32.mrb[17].mxu0 }
 0x182   : > { %v1305_v38 = vpop.eup %1304  ;;  %v451_v0 = vadd.f32 %v450_v37, %v1843_v55 }
 0x183   : > { %v1307_v39 = vpop.eup %1306  ;;  %655 = vmatprep.mubr.f32.mxu1 %v1305_v38 }
 0x184   : > { %1316 = vtanh.f32 %v451_v0  ;;  %v454_v40 = vpop.f32.mrb[18].mxu0  ;;  %656 = vmatmul.mubr.f32.gmra.mrb[10].mxu1 %v1307_v39 }
 0x185   : > { %1318 = vtanh.f32 %v449_v36  ;;  %v455_v41 = vadd.f32 %v454_v40, %v1841_v54  ;;  %v456_v42 = vpop.f32.mrb[19].mxu0 }
 0x186   : > { %v1309_v43 = vpop.eup %1308  ;;  %v457_v44 = vadd.f32 %v456_v42, %v1843_v55 }
 0x187   : > { %v1311_v45 = vpop.eup %1310  ;;  %660 = vmatprep.mubr.f32.mxu1 %v1309_v43 }
 0x188   : > { %1320 = vtanh.f32 %v457_v44  ;;  %v460_v46 = vpop.f32.mrb[20].mxu0  ;;  %661 = vmatmul.mubr.f32.gmra.mrb[12].mxu1 %v1311_v45 }
 0x189   : > { %1322 = vtanh.f32 %v455_v41  ;;  %v461_v47 = vadd.f32 %v460_v46, %v1841_v54  ;;  %v462_v48 = vpop.f32.mrb[21].mxu0 }
 0x18a   : > { %v1313_v50 = vpop.eup %1312  ;;  %v463_v51 = vadd.f32 %v462_v48, %v1843_v55 }
 0x18b   : > { %v1315_v52 = vpop.eup %1314  ;;  %665 = vmatprep.mubr.f32.mxu1 %v1313_v50 }
 0x18c   : > { %1324 = vtanh.f32 %v463_v51  ;;  %v466_v53 = vpop.f32.mrb[22].mxu0  ;;  %666 = vmatmul.mubr.f32.gmra.mrb[14].mxu1 %v1315_v52 }
 0x18d   : > { %1326 = vtanh.f32 %v461_v47  ;;  %v467_v56 = vadd.f32 %v466_v53, %v1841_v54  ;;  %v468_v57 = vpop.f32.mrb[23].mxu0 }
 0x18e   : > { %v1317_v58 = vpop.eup %1316  ;;  %v469_v59 = vadd.f32 %v468_v57, %v1843_v55 }
 0x18f   : > { %v1319_v60 = vpop.eup %1318  ;;  %670 = vmatprep.mubr.f32.mxu1 %v1317_v58 }
 0x190   : > { %1328 = vtanh.f32 %v469_v59  ;;  %v472_v61 = vpop.f32.mrb[24].mxu0  ;;  %671 = vmatmul.mubr.f32.gmra.mrb[16].mxu1 %v1319_v60 }
 0x191   : > { %1330 = vtanh.f32 %v467_v56  ;;  %v473_v62 = vadd.f32 %v472_v61, %v1841_v54  ;;  %v474_v63 = vpop.f32.mrb[25].mxu0 }
 0x192   : > { %v1321_v1 = vpop.eup %1320  ;;  %v475_v2 = vadd.f32 %v474_v63, %v1843_v55 }
 0x193   : > { %v1323_v3 = vpop.eup %1322  ;;  %675 = vmatprep.mubr.f32.mxu1 %v1321_v1 }
 0x194   : > { %1332 = vtanh.f32 %v475_v2  ;;  %v478_v4 = vpop.f32.mrb[26].mxu0  ;;  %676 = vmatmul.mubr.f32.gmra.mrb[18].mxu1 %v1323_v3 }
 0x195   : > { %1334 = vtanh.f32 %v473_v62  ;;  %v479_v5 = vadd.f32 %v478_v4, %v1841_v54  ;;  %v480_v6 = vpop.f32.mrb[27].mxu0 }
 0x196   : > { %v1325_v7 = vpop.eup %1324  ;;  %v481_v8 = vadd.f32 %v480_v6, %v1843_v55 }
 0x197   : > { %v1327_v9 = vpop.eup %1326  ;;  %680 = vmatprep.mubr.f32.mxu1 %v1325_v7 }
 0x198   : > { %1336 = vtanh.f32 %v481_v8  ;;  %v484_v10 = vpop.f32.mrb[28].mxu0  ;;  %681 = vmatmul.mubr.f32.gmra.mrb[20].mxu1 %v1327_v9 }
 0x199   : > { %1338 = vtanh.f32 %v479_v5  ;;  %v485_v11 = vadd.f32 %v484_v10, %v1841_v54  ;;  %v486_v12 = vpop.f32.mrb[29].mxu0 }
 0x19a   : > { %v1329_v13 = vpop.eup %1328  ;;  %v487_v14 = vadd.f32 %v486_v12, %v1843_v55 }
 0x19b   : > { %v1331_v15 = vpop.eup %1330  ;;  %685 = vmatprep.mubr.f32.mxu1 %v1329_v13 }
 0x19c   : > { %1340 = vtanh.f32 %v487_v14  ;;  %v490_v16 = vpop.f32.mrb[30].mxu0  ;;  %686 = vmatmul.mubr.f32.gmra.mrb[22].mxu1 %v1331_v15 }
 0x19d   : > { %1342 = vtanh.f32 %v485_v11  ;;  %v491_v17 = vadd.f32 %v490_v16, %v1841_v54  ;;  %v492_v18 = vpop.f32.mrb[31].mxu0  ;;  %v1878_v54 = vand.u32 127, %v324_v49 }
 0x19e   : > { %v1333_v19 = vpop.eup %1332  ;;  %v493_v20 = vadd.f32 %v492_v18, %v1843_v55 }
 0x19f   : > { %v1335_v21 = vpop.eup %1334  ;;  %690 = vmatprep.mubr.f32.mxu1 %v1333_v19  ;;  %vm713_vm0 = vcmp.lt.s32.totalorder %v1878_v54, 8  ;;  %vm890_vm1 = vcmp.eq.s32.totalorder %v1878_v54, 8 }
 0x1a0   : > { %1344 = vtanh.f32 %v493_v20  ;;  %691 = vmatmul.mubr.f32.gmra.mrb[24].mxu1 %v1335_v21 }
 0x1a1   : > { %1346 = vtanh.f32 %v491_v17 }
 0x1a2   : > { %v1337_v22 = vpop.eup %1336 }
 0x1a3   : > { %v1339_v23 = vpop.eup %1338  ;;  %695 = vmatprep.mubr.f32.mxu1 %v1337_v22 }
 0x1a4   : > { %696 = vmatmul.mubr.f32.gmra.mrb[26].mxu1 %v1339_v23 }
 0x1a6   : > { %v1341_v24 = vpop.eup %1340 }
 0x1a7   : > { %v1343_v25 = vpop.eup %1342  ;;  %700 = vmatprep.mubr.f32.mxu1 %v1341_v24 }
 0x1a8   : > { %701 = vmatmul.mubr.f32.gmra.mrb[28].mxu1 %v1343_v25 }
 0x1aa   : > { %v1345_v26 = vpop.eup %1344 }
 0x1ab   : > { %v1347_v27 = vpop.eup %1346  ;;  %705 = vmatprep.mubr.f32.mxu1 %v1345_v26 }
 0x1ac   : > { %706 = vmatmul.mubr.f32.gmra.mrb[30].mxu1 %v1347_v27 }
 0x243   : > { %v1098_v55 = vpop.f32.mrb[0].mxu1 }
 0x244   : > { %v1099_v28 = vpop.f32.mrb[1].mxu1 }
 0x245   : > { %v1100_v30 = vadd.f32 %v1099_v28, %v1098_v55 }
 0x247   : > { %v1101_v31 = vpop.f32.mrb[2].mxu1  ;;  %v633_v32 = vadd.f32 %v1100_v30, %v1883_v29 }
 0x248   : > { %v1102_v33 = vpop.f32.mrb[3].mxu1 }
 0x249   : > { %v1103_v34 = vadd.f32 %v1102_v33, %v1101_v31  ;;  %v1890_v49 = vsel %vm713_vm0, %v633_v32, -1e+30  ;;  %v1894_v35 = vsel %vm890_vm1, %v633_v32, 0.0 }
 0x24a   : > { %730 = vmax.xlane.f32.xlu0 %v1890_v49 }
 0x24b   : > { %v1104_v36 = vpop.f32.mrb[4].mxu1  ;;  %v638_v37 = vadd.f32 %v1103_v34, %v1883_v29 }
 0x24c   : > { %v1105_v38 = vpop.f32.mrb[5].mxu1 }
 0x24d   : > { %v1106_v0 = vadd.f32 %v1105_v38, %v1104_v36  ;;  %v1900_v39 = vsel %vm713_vm0, %v638_v37, -1e+30  ;;  %v1904_v40 = vsel %vm890_vm1, %v638_v37, 0.0 }
 0x24e   : > { %732 = vmax.xlane.f32.xlu0 %v1900_v39 }
 0x24f   : > { %v1107_v41 = vpop.f32.mrb[6].mxu1  ;;  %v643_v42 = vadd.f32 %v1106_v0, %v1883_v29 }
 0x250   : > { %v1108_v43 = vpop.f32.mrb[7].mxu1 }
 0x251   : > { %v1109_v44 = vadd.f32 %v1108_v43, %v1107_v41  ;;  %v1910_v45 = vsel %vm713_vm0, %v643_v42, -1e+30  ;;  %v1914_v46 = vsel %vm890_vm1, %v643_v42, 0.0 }
 0x252   : > { %734 = vmax.xlane.f32.xlu1 %v1910_v45 }
 0x253   : > { %v1110_v47 = vpop.f32.mrb[8].mxu1  ;;  %v648_v48 = vadd.f32 %v1109_v44, %v1883_v29 }
 0x254   : > { %v1111_v50 = vpop.f32.mrb[9].mxu1 }
 0x255   : > { %v1112_v51 = vadd.f32 %v1111_v50, %v1110_v47  ;;  %v1920_v52 = vsel %vm713_vm0, %v648_v48, -1e+30  ;;  %v1924_v53 = vsel %vm890_vm1, %v648_v48, 0.0 }
 0x256   : > { %736 = vmax.xlane.f32.xlu1 %v1920_v52 }
 0x257   : > { %v1113_v56 = vpop.f32.mrb[10].mxu1  ;;  %v653_v57 = vadd.f32 %v1112_v51, %v1883_v29 }
 0x258   : > { %v1114_v58 = vpop.f32.mrb[11].mxu1 }
 0x259   : > { %v1115_v59 = vadd.f32 %v1114_v58, %v1113_v56  ;;  %v1930_v60 = vsel %vm713_vm0, %v653_v57, -1e+30  ;;  %v1934_v61 = vsel %vm890_vm1, %v653_v57, 0.0 }
 0x25a   : > { %738 = vmax.xlane.f32.xlu0 %v1930_v60 }
 0x25b   : > { %v1116_v62 = vpop.f32.mrb[12].mxu1  ;;  %v658_v63 = vadd.f32 %v1115_v59, %v1883_v29 }
 0x25c   : > { %v1117_v1 = vpop.f32.mrb[13].mxu1 }
 0x25d   : > { %v1118_v2 = vadd.f32 %v1117_v1, %v1116_v62  ;;  %v1940_v3 = vsel %vm713_vm0, %v658_v63, -1e+30  ;;  %v1944_v4 = vsel %vm890_vm1, %v658_v63, 0.0 }
 0x25e   : > { %740 = vmax.xlane.f32.xlu1 %v1940_v3 }
 0x25f   : > { %v1119_v5 = vpop.f32.mrb[14].mxu1  ;;  %v663_v6 = vadd.f32 %v1118_v2, %v1883_v29 }
 0x260   : > { %v1120_v7 = vpop.f32.mrb[15].mxu1 }
 0x261   : > { %v1121_v8 = vadd.f32 %v1120_v7, %v1119_v5  ;;  %v1950_v9 = vsel %vm713_vm0, %v663_v6, -1e+30  ;;  %v1954_v10 = vsel %vm890_vm1, %v663_v6, 0.0 }
 0x262   : > { %742 = vmax.xlane.f32.xlu0 %v1950_v9 }
 0x263   : > { %v1122_v11 = vpop.f32.mrb[16].mxu1  ;;  %v668_v12 = vadd.f32 %v1121_v8, %v1883_v29 }
 0x264   : > { %v1123_v13 = vpop.f32.mrb[17].mxu1 }
 0x265   : > { %v1124_v14 = vadd.f32 %v1123_v13, %v1122_v11  ;;  %v1960_v15 = vsel %vm713_vm0, %v668_v12, -1e+30  ;;  %v1964_v16 = vsel %vm890_vm1, %v668_v12, 0.0 }
 0x266   : > { %744 = vmax.xlane.f32.xlu1 %v1960_v15 }
 0x267   : > { %v1125_v17 = vpop.f32.mrb[18].mxu1  ;;  %v673_v18 = vadd.f32 %v1124_v14, %v1883_v29 }
 0x268   : > { %v1126_v19 = vpop.f32.mrb[19].mxu1 }
 0x269   : > { %v1127_v20 = vadd.f32 %v1126_v19, %v1125_v17  ;;  %v1970_v21 = vsel %vm713_vm0, %v673_v18, -1e+30  ;;  %v1974_v22 = vsel %vm890_vm1, %v673_v18, 0.0 }
 0x26a   : > { %746 = vmax.xlane.f32.xlu0 %v1970_v21 }
 0x26b   : > { %v1128_v23 = vpop.f32.mrb[20].mxu1  ;;  %v678_v24 = vadd.f32 %v1127_v20, %v1883_v29 }
 0x26c   : > { %v1129_v25 = vpop.f32.mrb[21].mxu1 }
 0x26d   : > { %v1130_v26 = vadd.f32 %v1129_v25, %v1128_v23  ;;  %v1980_v27 = vsel %vm713_vm0, %v678_v24, -1e+30  ;;  %v1984_v55 = vsel %vm890_vm1, %v678_v24, 0.0 }
 0x26e   : > { %748 = vmax.xlane.f32.xlu1 %v1980_v27 }
 0x26f   : > { %v1131_v28 = vpop.f32.mrb[22].mxu1  ;;  %v683_v30 = vadd.f32 %v1130_v26, %v1883_v29 }
 0x270   : > { %v1132_v31 = vpop.f32.mrb[23].mxu1 }
 0x271   : > { %v1133_v32 = vadd.f32 %v1132_v31, %v1131_v28  ;;  %v1990_v33 = vsel %vm713_vm0, %v683_v30, -1e+30  ;;  %v1994_v34 = vsel %vm890_vm1, %v683_v30, 0.0 }
 0x272   : > { %750 = vmax.xlane.f32.xlu0 %v1990_v33 }
 0x273   : > { %v1134_v36 = vpop.f32.mrb[24].mxu1  ;;  %v688_v37 = vadd.f32 %v1133_v32, %v1883_v29 }
 0x274   : > { %v1135_v38 = vpop.f32.mrb[25].mxu1 }
 0x275   : > { %v1136_v0 = vadd.f32 %v1135_v38, %v1134_v36  ;;  %v2000_v41 = vsel %vm713_vm0, %v688_v37, -1e+30  ;;  %v2004_v42 = vsel %vm890_vm1, %v688_v37, 0.0 }
 0x276   : > { %752 = vmax.xlane.f32.xlu1 %v2000_v41 }
 0x277   : > { %v1137_v43 = vpop.f32.mrb[26].mxu1  ;;  %v693_v44 = vadd.f32 %v1136_v0, %v1883_v29 }
 0x278   : > { %v1138_v47 = vpop.f32.mrb[27].mxu1 }
 0x279   : > { %v1139_v48 = vadd.f32 %v1138_v47, %v1137_v43  ;;  %v2010_v50 = vsel %vm713_vm0, %v693_v44, -1e+30  ;;  %v2014_v51 = vsel %vm890_vm1, %v693_v44, 0.0 }
 0x27a   : > { %754 = vmax.xlane.f32.xlu0 %v2010_v50 }
 0x27b   : > { %v1140_v56 = vpop.f32.mrb[28].mxu1  ;;  %v698_v57 = vadd.f32 %v1139_v48, %v1883_v29 }
 0x27c   : > { %v1141_v58 = vpop.f32.mrb[29].mxu1 }
 0x27d   : > { %v1142_v59 = vadd.f32 %v1141_v58, %v1140_v56  ;;  %v2020_v62 = vsel %vm713_vm0, %v698_v57, -1e+30  ;;  %v2024_v63 = vsel %vm890_vm1, %v698_v57, 0.0 }
 0x27e   : > { %756 = vmax.xlane.f32.xlu1 %v2020_v62 }
 0x27f   : > { %v1143_v1 = vpop.f32.mrb[30].mxu1  ;;  %v703_v2 = vadd.f32 %v1142_v59, %v1883_v29 }
 0x280   : > { %v1144_v5 = vpop.f32.mrb[31].mxu1 }
 0x281   : > { %v1145_v6 = vadd.f32 %v1144_v5, %v1143_v1  ;;  %v2030_v7 = vsel %vm713_vm0, %v703_v2, -1e+30  ;;  %v2034_v8 = vsel %vm890_vm1, %v703_v2, 0.0 }
 0x282   : > { %758 = vmax.xlane.f32.xlu0 %v2030_v7 }
 0x283   : > { %v708_v11 = vadd.f32 %v1145_v6, %v1883_v29 }
 0x285   : > { %v2040_v12 = vsel %vm713_vm0, %v708_v11, -1e+30  ;;  %v2044_v13 = vsel %vm890_vm1, %v708_v11, 0.0 }
 0x286   : > { %760 = vmax.xlane.f32.xlu1 %v2040_v12 }
 0x2d7   : > { %v731_v14 = vpop.xlane.xlu0 %730 }
 0x2d8   : > { %v762_v17 = vsub.f32 %v1890_v49, %v731_v14 }
 0x2da   : > { %v778_v18 = vmul.f32 1.442695, %v762_v17 }
 0x2db   : > { %v733_v19 = vpop.xlane.xlu0 %732 }
 0x2dc   : > { %1348 = vpow2.f32 %v778_v18  ;;  %v763_v20 = vsub.f32 %v1900_v39, %v733_v19 }
 0x2de   : > { %v780_v23 = vmul.f32 1.442695, %v763_v20 }
 0x2df   : > { %v735_v29 = vpop.xlane.xlu1 %734 }
 0x2e0   : > { %1350 = vpow2.f32 %v780_v23  ;;  %v764_v24 = vsub.f32 %v1910_v45, %v735_v29 }
 0x2e2   : > { %v782_v25 = vmul.f32 1.442695, %v764_v24 }
 0x2e3   : > { %v737_v26 = vpop.xlane.xlu1 %736 }
 0x2e4   : > { %1352 = vpow2.f32 %v782_v25  ;;  %v765_v28 = vsub.f32 %v1920_v52, %v737_v26 }
 0x2e6   : > { %v1349_v30 = vpop.eup %1348  ;;  %v784_v31 = vmul.f32 1.442695, %v765_v28 }
 0x2e7   : > { %v739_v32 = vpop.xlane.xlu0 %738  ;;  %v2053_v49 = vsel %vm713_vm0, %v1349_v30, 0.0 }
 0x2e8   : > { %1354 = vpow2.f32 %v784_v31  ;;  %v766_v39 = vsub.f32 %v1930_v60, %v739_v32  ;;  %826 = vadd.xlane.f32.xlu0 %v2053_v49 }
 0x2ea   : > { %v1351_v36 = vpop.eup %1350  ;;  %v786_v37 = vmul.f32 1.442695, %v766_v39 }
 0x2eb   : > { %v741_v45 = vpop.xlane.xlu1 %740  ;;  %v2059_v38 = vsel %vm713_vm0, %v1351_v36, 0.0 }
 0x2ec   : > { %1356 = vpow2.f32 %v786_v37  ;;  %v767_v52 = vsub.f32 %v1940_v3, %v741_v45  ;;  %828 = vadd.xlane.f32.xlu1 %v2059_v38 }
 0x2ee   : > { %v1353_v0 = vpop.eup %1352  ;;  %v788_v43 = vmul.f32 1.442695, %v767_v52 }
 0x2ef   : > { %v743_v44 = vpop.xlane.xlu0 %742  ;;  %v2065_v60 = vsel %vm713_vm0, %v1353_v0, 0.0 }
 0x2f0   : > { %1358 = vpow2.f32 %v788_v43  ;;  %v768_v47 = vsub.f32 %v1950_v9, %v743_v44  ;;  %830 = vadd.xlane.f32.xlu0 %v2065_v60 }
 0x2f2   : > { %v1355_v48 = vpop.eup %1354  ;;  %v790_v56 = vmul.f32 1.442695, %v768_v47 }
 0x2f3   : > { %v745_v57 = vpop.xlane.xlu1 %744  ;;  %v2071_v3 = vsel %vm713_vm0, %v1355_v48, 0.0 }
 0x2f4   : > { %1360 = vpow2.f32 %v790_v56  ;;  %v769_v58 = vsub.f32 %v1960_v15, %v745_v57  ;;  %832 = vadd.xlane.f32.xlu1 %v2071_v3 }
 0x2f6   : > { %v1357_v59 = vpop.eup %1356  ;;  %v792_v1 = vmul.f32 1.442695, %v769_v58 }
 0x2f7   : > { %v747_v2 = vpop.xlane.xlu0 %746  ;;  %v2077_v9 = vsel %vm713_vm0, %v1357_v59, 0.0 }
 0x2f8   : > { %1362 = vpow2.f32 %v792_v1  ;;  %v770_v5 = vsub.f32 %v1970_v21, %v747_v2  ;;  %834 = vadd.xlane.f32.xlu0 %v2077_v9 }
 0x2fa   : > { %v1359_v6 = vpop.eup %1358  ;;  %v794_v11 = vmul.f32 1.442695, %v770_v5 }
 0x2fb   : > { %v749_v14 = vpop.xlane.xlu1 %748  ;;  %v2083_v15 = vsel %vm713_vm0, %v1359_v6, 0.0 }
 0x2fc   : > { %1364 = vpow2.f32 %v794_v11  ;;  %v771_v17 = vsub.f32 %v1980_v27, %v749_v14  ;;  %836 = vadd.xlane.f32.xlu1 %v2083_v15 }
 0x2fe   : > { %v1361_v18 = vpop.eup %1360  ;;  %v796_v19 = vmul.f32 1.442695, %v771_v17 }
 0x2ff   : > { %v751_v20 = vpop.xlane.xlu0 %750  ;;  %v2089_v21 = vsel %vm713_vm0, %v1361_v18, 0.0 }
 0x300   : > { %1366 = vpow2.f32 %v796_v19  ;;  %v772_v23 = vsub.f32 %v1990_v33, %v751_v20  ;;  %838 = vadd.xlane.f32.xlu0 %v2089_v21 }
 0x302   : > { %v1363_v29 = vpop.eup %1362  ;;  %v798_v24 = vmul.f32 1.442695, %v772_v23 }
 0x303   : > { %v753_v25 = vpop.xlane.xlu1 %752  ;;  %v2095_v27 = vsel %vm713_vm0, %v1363_v29, 0.0 }
 0x304   : > { %1368 = vpow2.f32 %v798_v24  ;;  %v773_v26 = vsub.f32 %v2000_v41, %v753_v25  ;;  %840 = vadd.xlane.f32.xlu1 %v2095_v27 }
 0x306   : > { %v1365_v28 = vpop.eup %1364  ;;  %v800_v30 = vmul.f32 1.442695, %v773_v26 }
 0x307   : > { %v755_v31 = vpop.xlane.xlu0 %754  ;;  %v2101_v33 = vsel %vm713_vm0, %v1365_v28, 0.0 }
 0x308   : > { %1370 = vpow2.f32 %v800_v30  ;;  %v774_v32 = vsub.f32 %v2010_v50, %v755_v31  ;;  %842 = vadd.xlane.f32.xlu0 %v2101_v33 }
 0x30a   : > { %v1367_v39 = vpop.eup %1366  ;;  %v802_v36 = vmul.f32 1.442695, %v774_v32 }
 0x30b   : > { %v757_v37 = vpop.xlane.xlu1 %756  ;;  %v2107_v41 = vsel %vm713_vm0, %v1367_v39, 0.0 }
 0x30c   : > { %1372 = vpow2.f32 %v802_v36  ;;  %v775_v45 = vsub.f32 %v2020_v62, %v757_v37  ;;  %844 = vadd.xlane.f32.xlu1 %v2107_v41 }
 0x30e   : > { %v1369_v52 = vpop.eup %1368  ;;  %v804_v0 = vmul.f32 1.442695, %v775_v45 }
 0x30f   : > { %v759_v43 = vpop.xlane.xlu0 %758  ;;  %v2113_v50 = vsel %vm713_vm0, %v1369_v52, 0.0 }
 0x310   : > { %1374 = vpow2.f32 %v804_v0  ;;  %v776_v44 = vsub.f32 %v2030_v7, %v759_v43  ;;  %846 = vadd.xlane.f32.xlu0 %v2113_v50 }
 0x312   : > { %v1371_v47 = vpop.eup %1370  ;;  %v806_v48 = vmul.f32 1.442695, %v776_v44 }
 0x313   : > { %v761_v56 = vpop.xlane.xlu1 %760  ;;  %v2119_v62 = vsel %vm713_vm0, %v1371_v47, 0.0 }
 0x314   : > { %1376 = vpow2.f32 %v806_v48  ;;  %v777_v57 = vsub.f32 %v2040_v12, %v761_v56  ;;  %848 = vadd.xlane.f32.xlu1 %v2119_v62 }
 0x316   : > { %v1373_v58 = vpop.eup %1372  ;;  %v808_v59 = vmul.f32 1.442695, %v777_v57 }
 0x317   : > { %v2125_v1 = vsel %vm713_vm0, %v1373_v58, 0.0 }
 0x318   : > { %1378 = vpow2.f32 %v808_v59  ;;  %850 = vadd.xlane.f32.xlu0 %v2125_v1 }
 0x31a   : > { %v1375_v7 = vpop.eup %1374 }
 0x31b   : > { %v2130_v2 = vsel %vm713_vm0, %v1375_v7, 0.0 }
 0x31c   : > { %852 = vadd.xlane.f32.xlu1 %v2130_v2 }
 0x31e   : > { %v1377_v5 = vpop.eup %1376 }
 0x31f   : > { %v2135_v12 = vsel %vm713_vm0, %v1377_v5, 0.0 }
 0x320   : > { %854 = vadd.xlane.f32.xlu0 %v2135_v12 }
 0x322   : > { %v1379_v6 = vpop.eup %1378 }
 0x323   : > { %v2140_v11 = vsel %vm713_vm0, %v1379_v6, 0.0 }
 0x324   : > { %856 = vadd.xlane.f32.xlu1 %v2140_v11 }
 0x375   : > { %v827_v14 = vpop.xlane.xlu0 %826 }
 0x376   : > { %1380 = vrcp.f32 %v827_v14 }
 0x379   : > { %v829_v17 = vpop.xlane.xlu1 %828 }
 0x37a   : > { %1382 = vrcp.f32 %v829_v17 }
 0x37d   : > { %v831_v18 = vpop.xlane.xlu0 %830 }
 0x37e   : > { %1384 = vrcp.f32 %v831_v18 }
 0x380   : > { %v1381_v19 = vpop.eup %1380 }
 0x381   : > { %v874_v20 = vmul.f32 %v1381_v19, %v2053_v49  ;;  %v833_v23 = vpop.xlane.xlu1 %832 }
 0x382   : > { %1386 = vrcp.f32 %v833_v23 }
 0x383   : > { %v907_v29 = vadd.f32 %v1894_v35, %v874_v20 }
 0x384   : > { %v1383_v24 = vpop.eup %1382 }
 0x385   : > { %923 = vst [vmem:[%s2147_s10] sm:$0xff] %v907_v29  ;;  %v875_v54 = vmul.f32 %v1383_v24, %v2059_v38  ;;  %v835_v25 = vpop.xlane.xlu0 %834 }
 0x386   : > { %1388 = vrcp.f32 %v835_v25 }
 0x387   : > { %v908_v26 = vadd.f32 %v1904_v40, %v875_v54 }
 0x388   : > { %v1385_v49 = vpop.eup %1384 }
 0x389   : > { %924 = vst [vmem:[%s2147_s10 + $0x8] sm:$0xff] %v908_v26  ;;  %v876_v28 = vmul.f32 %v1385_v49, %v2065_v60  ;;  %v837_v35 = vpop.xlane.xlu1 %836 }
 0x38a   : > { %1390 = vrcp.f32 %v837_v35 }
 0x38b   : > { %v909_v30 = vadd.f32 %v1914_v46, %v876_v28 }
 0x38c   : > { %v1387_v31 = vpop.eup %1386 }
 0x38d   : > { %925 = vst [vmem:[%s2147_s10 + $0x10] sm:$0xff] %v909_v30  ;;  %v877_v32 = vmul.f32 %v1387_v31, %v2071_v3  ;;  %v839_v39 = vpop.xlane.xlu0 %838 }
 0x38e   : > { %1392 = vrcp.f32 %v839_v39 }
 0x38f   : > { %v910_v38 = vadd.f32 %v1924_v53, %v877_v32 }
 0x390   : > { %v1389_v36 = vpop.eup %1388 }
 0x391   : > { %926 = vst [vmem:[%s2147_s10 + $0x18] sm:$0xff] %v910_v38  ;;  %v878_v40 = vmul.f32 %v1389_v36, %v2077_v9  ;;  %v841_v37 = vpop.xlane.xlu1 %840 }
 0x392   : > { %1394 = vrcp.f32 %v841_v37 }
 0x393   : > { %v911_v60 = vadd.f32 %v1934_v61, %v878_v40 }
 0x394   : > { %v1391_v45 = vpop.eup %1390 }
 0x395   : > { %927 = vst [vmem:[%s2147_s10 + $0x20] sm:$0xff] %v911_v60  ;;  %v879_v46 = vmul.f32 %v1391_v45, %v2083_v15  ;;  %v843_v52 = vpop.xlane.xlu0 %842 }
 0x396   : > { %1396 = vrcp.f32 %v843_v52 }
 0x397   : > { %v912_v3 = vadd.f32 %v1944_v4, %v879_v46 }
 0x398   : > { %v1393_v0 = vpop.eup %1392 }
 0x399   : > { %928 = vst [vmem:[%s2147_s10 + $0x28] sm:$0xff] %v912_v3  ;;  %v880_v53 = vmul.f32 %v1393_v0, %v2089_v21  ;;  %v845_v43 = vpop.xlane.xlu1 %844 }
 0x39a   : > { %1398 = vrcp.f32 %v845_v43 }
 0x39b   : > { %v913_v9 = vadd.f32 %v1954_v10, %v880_v53 }
 0x39c   : > { %v1395_v44 = vpop.eup %1394 }
 0x39d   : > { %929 = vst [vmem:[%s2147_s10 + $0x30] sm:$0xff] %v913_v9  ;;  %v881_v61 = vmul.f32 %v1395_v44, %v2095_v27  ;;  %v847_v47 = vpop.xlane.xlu0 %846 }
 0x39e   : > { %1400 = vrcp.f32 %v847_v47 }
 0x39f   : > { %v914_v15 = vadd.f32 %v1964_v16, %v881_v61 }
 0x3a0   : > { %v1397_v48 = vpop.eup %1396 }
 0x3a1   : > { %930 = vst [vmem:[%s2147_s10 + $0x38] sm:$0xff] %v914_v15  ;;  %v882_v4 = vmul.f32 %v1397_v48, %v2101_v33  ;;  %v849_v56 = vpop.xlane.xlu1 %848 }
 0x3a2   : > { %1402 = vrcp.f32 %v849_v56 }
 0x3a3   : > { %v915_v21 = vadd.f32 %v1974_v22, %v882_v4 }
 0x3a4   : > { %v1399_v57 = vpop.eup %1398 }
 0x3a5   : > { %931 = vst [vmem:[%s2147_s10 + $0x40] sm:$0xff] %v915_v21  ;;  %v883_v10 = vmul.f32 %v1399_v57, %v2107_v41  ;;  %v851_v58 = vpop.xlane.xlu0 %850 }
 0x3a6   : > { %1404 = vrcp.f32 %v851_v58 }
 0x3a7   : > { %v916_v27 = vadd.f32 %v1984_v55, %v883_v10 }
 0x3a8   : > { %v1401_v59 = vpop.eup %1400 }
 0x3a9   : > { %932 = vst [vmem:[%s2147_s10 + $0x48] sm:$0xff] %v916_v27  ;;  %v884_v16 = vmul.f32 %v1401_v59, %v2113_v50  ;;  %v853_v7 = vpop.xlane.xlu1 %852 }
 0x3aa   : > { %1406 = vrcp.f32 %v853_v7 }
 0x3ab   : > { %v917_v33 = vadd.f32 %v1994_v34, %v884_v16 }
 0x3ac   : > { %v1403_v5 = vpop.eup %1402 }
 0x3ad   : > { %933 = vst [vmem:[%s2147_s10 + $0x50] sm:$0xff] %v917_v33  ;;  %v885_v22 = vmul.f32 %v1403_v5, %v2119_v62  ;;  %v855_v41 = vpop.xlane.xlu0 %854 }
 0x3ae   : > { %1408 = vrcp.f32 %v855_v41 }
 0x3af   : > { %v918_v6 = vadd.f32 %v2004_v42, %v885_v22 }
 0x3b0   : > { %v1405_v55 = vpop.eup %1404 }
 0x3b1   : > { %934 = vst [vmem:[%s2147_s10 + $0x58] sm:$0xff] %v918_v6  ;;  %v886_v50 = vmul.f32 %v1405_v55, %v2125_v1  ;;  %v857_v14 = vpop.xlane.xlu1 %856 }
 0x3b2   : > { %1410 = vrcp.f32 %v857_v14 }
 0x3b3   : > { %v919_v34 = vadd.f32 %v2014_v51, %v886_v50 }
 0x3b4   : > { %v1407_v17 = vpop.eup %1406 }
 0x3b5   : > { %935 = vst [vmem:[%s2147_s10 + $0x60] sm:$0xff] %v919_v34  ;;  %v887_v62 = vmul.f32 %v1407_v17, %v2130_v2 }
 0x3b7   : > { %v920_v18 = vadd.f32 %v2024_v63, %v887_v62 }
 0x3b8   : > { %v1409_v19 = vpop.eup %1408 }
 0x3b9   : > { %936 = vst [vmem:[%s2147_s10 + $0x68] sm:$0xff] %v920_v18  ;;  %v888_v42 = vmul.f32 %v1409_v19, %v2135_v12 }
 0x3bb   : > { %v921_v20 = vadd.f32 %v2034_v8, %v888_v42 }
 0x3bc   : > { %v1411_v1 = vpop.eup %1410 }
 0x3bd   : > { %937 = vst [vmem:[%s2147_s10 + $0x70] sm:$0xff] %v921_v20  ;;  %v889_v51 = vmul.f32 %v1411_v1, %v2140_v11 }
 0x3bf   : > { %v922_v63 = vadd.f32 %v2044_v13, %v889_v51 }
 0x3c1   : > { %938 = vst [vmem:[%s2147_s10 + $0x78] sm:$0xff] %v922_v63 }
 0x3c2   : > { %1511 = shalt.err (!%p1508_p2)
}
 0x3c3   : > { %s1512_s14 = scalar_lea.hbm %s2198_s11, 2048  ;;  %s1516_s12 = scalar_lea.hbm %s2251_s5, 4096 }
 0x3c4   : > { %p1513_p13 = scmp.ne.s32.totalorder %s2198_s11, %s1512_s14  ;;  %p1517_p4 = scmp.lt.u32.totalorder %s2198_s11, %s2251_s5 }
 0x3c5   : > { %p1518_p7 = scmp.lt.u32.totalorder %s1516_s12, %s1512_s14  ;;  %p1520_p11 = scmp.lt.u32.totalorder %s1512_s14, %s2198_s11 }
 0x3c6   : > { %p1514_p6 = pnand %p1513_p13, %p2265_p0 }
 0x3c7   : > { %p1519_p8 = por %p1518_p7, %p1517_p4 }
 0x3c8   : > { %p1515_p10 = pneg %p1514_p6 }
 0x3c9   : > { %p1521_p1 = por %p1520_p11, %p1519_p8 }
 0x3cb   : > { %p1522_p3 = pnand %p1521_p1, %p1515_p10 }
 0x3cd   : > { %1525 = shalt.err (!%p1522_p3)
}
 0x3ce   : > { %s1579_s28 = smov 128   ;;  %s1580_s9 = smov 8  }
 0x3cf   : > { %1220 = dma.vmem_to_hbm [thread:$0]  (%p2265_p0), %s2200_s15, 2048, %s2198_s11, %s940_s23, %s1579_s28, %s1579_s28, %s1580_s9  }
 0x3d0 PF: > { %s968_s30 = sand.u32 1, %s1556_s18   ;;  %p2266_p5 = scmp.ne.s32.totalorder %s2256_s25, 0 }
 0x3d1   : > { %p2267_p9 = scmp.ge.s32.totalorder %s1568_s21, 2  ;;  %s969_s22 = scalar_lea.sflag [#allocation4], %s968_s30 }
 0x3d3   : > { %p1234_p12 = pnand %p2267_p9, %p2266_p5 }
 0x3d5   : > { %1551 = dma.done.wait (!%p1234_p12), %s969_s22, 2048  }
 0x3d6   : > { %1553 = vsyncadd (!%p1234_p12), %s969_s22, 4294965248  ;;  %p19_p2 = scmp.ge.s32.totalorder %s1724_s16, 4   ;;  %s2268_s18 = smov %s1560_s19 }
 0x3d7   : > { %s2269_s19 = smov %s1564_s20  ;;  %s2270_s20 = smov %s1733_s27 }
 0x3d8   : > { %s2271_s21 = smov %s1724_s16  ;;  %21 = sbr.rel (!%p19_p2) target bundleno = 6 (0x6), region = 93 }
 0x3df   :  { %974 = vsyncpa [#allocation3], 1 }
 0x3e0   :  { %976 = vsyncpa [#allocation3 + $0x1], 1 }
 0x3e1   :  { %977 = vsyncpa [#allocation6], 1 }
 0x3e2   :  { %978 = vsyncpa [#allocation4], 1 }
 0x3e3   :  { %980 = vsyncpa [#allocation4 + $0x1], 1 }

</bundles_post_ra>
